<compile_context>
chip_gen: v7x
topology: tpu7x:2x2x1
jax: 0.10.0
libtpu: 0.0.40
codegen_flags: <defaults>
</compile_context>

<pallas_src>
import functools

import jax
import jax.numpy as jnp
from jax.experimental import pallas as pl
from jax.experimental.pallas import tpu as pltpu


def _round_up(x, m):
    return ((x + m - 1) // m) * m


def _vmem_budget_and_limit():
    """Generation-aware VMEM budget / scoped limit (bytes). Conservative fallback."""
    cap = 64 * 1024 * 1024  # assume the smallest (v7x per-TC physical) if unknown
    try:
        info = pltpu.get_tpu_info()
        cap_attr = getattr(info, "vmem_capacity_bytes", None)
        if cap_attr:
            cap = int(cap_attr)
    except Exception:
        pass
    budget = max(16 * 1024 * 1024, int(0.55 * cap))   # what the tile chooser targets
    limit = max(budget + 4 * 1024 * 1024, int(0.75 * cap))  # Mosaic scoped-vmem limit
    return budget, limit


def _choose_tile_n(N, Dp, Kp, *, budget_bytes, max_tile=1024, single_buffer_const=True):
    """Largest multiple-of-8 row tile whose full VMEM footprint fits the budget."""
    const_mult = 1 if single_buffer_const else 2
    # Resident grid-invariant blocks: codebook (Kp,Dp) + |w|^2 (1,Kp).
    fixed = const_mult * 4 * (Kp * Dp + Kp)
    # Small per-tile partial outputs (double-buffered).
    fixed += 2 * 4 * (Dp + Kp)
    # Per-row bytes:
    #   I/O blocks, double-buffered: x (Dp f32), q (Dp f32), idx (1 i32)
    #   in-kernel temporaries: ~4 x (tn,Kp) f32/i32 (xw, dist, iota, one-hot)
    #                          ~2 x (tn,Dp) f32     (diff etc.)
    per_row = 2 * 4 * (2 * Dp + 1) + 4 * (4 * Kp + 2 * Dp)
    t = (budget_bytes - fixed) // per_row
    t = max(8, min(max_tile, int(t)))
    t = max(8, (t // 8) * 8)
    # Guarantee >= 2 grid steps whenever possible so the "parallel" token axis
    # can actually shard across both TensorCores on v7x.
    n_pad8 = _round_up(N, 8)
    if n_pad8 > 8:
        t = min(t, _round_up((n_pad8 + 1) // 2, 8))
    else:
        t = min(t, n_pad8)
    return int(t)


def _const_block_spec(block_shape, single_buffer):
    """Grid-invariant operand: constant index_map; single-buffer when supported."""
    index_map = lambda i: (0,) * len(block_shape)
    if single_buffer and hasattr(pl, "Buffered"):
        try:
            return pl.BlockSpec(block_shape, index_map, pipeline_mode=pl.Buffered(1))
        except TypeError:
            pass
    return pl.BlockSpec(block_shape, index_map)


def _vq_kernel(n_valid, dist_dtype, x_ref, w_ref, w2_ref,
               q_ref, idx_ref, sse_ref, cnt_ref):
    i = pl.program_id(0)

    x = x_ref[...]                      # (tn, Dp) f32
    w = w_ref[...]                      # (Kp, Dp) f32 (grid-invariant)
    w2 = w2_ref[...]                    # (1, Kp)  f32 (1e30 for padded codes)
    tn = x.shape[0]
    Kp = w.shape[0]

    # argmin_k |x - w_k|^2 == argmin_k (|w_k|^2 - 2 x.w_k); |x|^2 is row-constant.
    # Contract the embedding dim of BOTH operands -> no codebook transpose.
    xd = x.astype(dist_dtype)
    wd = w.astype(dist_dtype)
    xw = jax.lax.dot_general(
        xd, wd, dimension_numbers=(((1,), (1,)), ((), ())),
        preferred_element_type=jnp.float32)             # (tn, Kp)  MXU
    dist = w2 - 2.0 * xw                                 # f32

    # First-occurrence argmin (matches torch.argmin tie-breaking).
    min_d = jnp.min(dist, axis=1, keepdims=True)                     # (tn, 1)
    col = jax.lax.broadcasted_iota(jnp.int32, dist.shape, 1)         # (tn, Kp)
    idx = jnp.min(jnp.where(dist <= min_d, col, Kp), axis=1, keepdims=True)

    # One-hot stays in VMEM only (never written to HBM); q = exact codebook rows.
    enc = (col == idx).astype(jnp.float32)                           # (tn, Kp)
    q = jnp.dot(enc, w, preferred_element_type=jnp.float32)          # (tn, Dp) MXU

    q_ref[...] = q
    idx_ref[...] = idx.astype(jnp.int32)

    # Per-tile partials (no cross-grid accumulation -> token axis stays parallel).
    # Padded token rows are masked out with where (robust even to garbage rows).
    row = i * tn + jax.lax.broadcasted_iota(jnp.int32, (tn, 1), 0)
    valid = row < n_valid                                            # (tn, 1) bool

    diff = jnp.where(valid, q - x, 0.0)
    sse_ref[...] = jnp.sum(diff * diff, axis=0, keepdims=True)[None]           # (1,1,Dp)
    cnt_ref[...] = jnp.sum(jnp.where(valid, enc, 0.0), axis=0, keepdims=True)[None]  # (1,1,Kp)


@functools.partial(
    jax.jit,
    static_argnames=("commitment_cost", "tile_n", "distance_dtype",
                     "single_buffer_const"))
def _vq_forward_impl(inputs, weight, *, commitment_cost, tile_n, distance_dtype,
                     single_buffer_const):
    B, D, L = inputs.shape
    K = weight.shape[0]
    N = B * L

    Dp = _round_up(D, 128)       # lane-dense quantized / sse blocks
    Kp = _round_up(K, 128)       # lane-dense codebook / count blocks

    budget, vmem_limit = _vmem_budget_and_limit()
    if tile_n is None:
        tile_n = _choose_tile_n(N, Dp, Kp, budget_bytes=budget,
                                single_buffer_const=single_buffer_const)
    else:
        tile_n = max(8, (int(tile_n) // 8) * 8)
    Np = _round_up(N, tile_n)
    num_tiles = Np // tile_n

    # NCL -> NLC -> flatten tokens; zero-pad rows/cols (one fused copy pass).
    x_flat = jnp.transpose(inputs.astype(jnp.float32), (0, 2, 1)).reshape(N, D)
    x_pad = jnp.pad(x_flat, ((0, Np - N), (0, Dp - D)))

    w = weight.astype(jnp.float32)
    w_pad = jnp.pad(w, ((0, Kp - K), (0, Dp - D)))
    # |w|^2, huge for padded codebook rows so they can never win the argmin.
    w2 = jnp.sum(w * w, axis=1)[None, :]
    w2_pad = jnp.pad(w2, ((0, 0), (0, Kp - K)), constant_values=1e30)

    cost = pl.CostEstimate(
        flops=4 * Np * Kp * Dp,                 # two MXU matmuls per token
        transcendentals=0,
        bytes_accessed=int(
            4 * Np * Dp                          # x read (f32)
            + 4 * (Kp * Dp + Kp)                 # codebook + |w|^2, read once
            + 4 * Np * Dp                        # q write
            + 4 * Np                             # idx write
            + 4 * num_tiles * (Dp + Kp)),        # partials write
    )

    q_pad, idx_pad, sse_part, cnt_part = pl.pallas_call(
        functools.partial(_vq_kernel, N, distance_dtype),
        out_shape=(
            jax.ShapeDtypeStruct((Np, Dp), jnp.float32),            # quantized
            jax.ShapeDtypeStruct((Np, 1), jnp.int32),               # code indices
            jax.ShapeDtypeStruct((num_tiles, 1, Dp), jnp.float32),  # sse partials
            jax.ShapeDtypeStruct((num_tiles, 1, Kp), jnp.float32),  # cnt partials
        ),
        grid_spec=pltpu.PrefetchScalarGridSpec(
            num_scalar_prefetch=0,
            grid=(num_tiles,),
            in_specs=[
                pl.BlockSpec((tile_n, Dp), lambda i: (i, 0)),            # x tile
                _const_block_spec((Kp, Dp), single_buffer_const),        # codebook
                _const_block_spec((1, Kp), single_buffer_const),         # |w|^2
            ],
            out_specs=[
                pl.BlockSpec((tile_n, Dp), lambda i: (i, 0)),
                pl.BlockSpec((tile_n, 1), lambda i: (i, 0)),
                pl.BlockSpec((1, 1, Dp), lambda i: (i, 0, 0)),
                pl.BlockSpec((1, 1, Kp), lambda i: (i, 0, 0)),
            ],
        ),
        compiler_params=pltpu.CompilerParams(
            dimension_semantics=("parallel",),       # no cross-step dependency
            vmem_limit_bytes=int(vmem_limit),
        ),
        cost_estimate=cost,
    )(x_pad, w_pad, w2_pad)

    # --- cheap glue (matches the PyTorch forward semantics) ---
    sse = jnp.sum(sse_part)
    counts = jnp.sum(cnt_part, axis=(0, 1))[:K]

    mse = sse / (N * D)
    # e_latent_loss == q_latent_loss numerically in the forward value.
    vq_loss = (1.0 + commitment_cost) * mse

    avg_probs = counts / N
    perplexity = jnp.exp(-jnp.sum(avg_probs * jnp.log(avg_probs + 1e-10)))

    # Straight-through estimator: forward value is exactly `quantized`.
    quantized = jnp.transpose(q_pad[:N, :D].reshape(B, L, D), (0, 2, 1))
    encodings = jax.nn.one_hot(idx_pad[:N, 0], K, dtype=jnp.float32)
    return vq_loss, quantized, perplexity, encodings


def vector_quantizer_forward(inputs, weight, *, commitment_cost=0.25,
                             tile_n=None, distance_dtype=jnp.float32):
    """inputs: (B, D, L) float32 (PyTorch NCL layout); weight: (K, D)."""
    kwargs = dict(commitment_cost=float(commitment_cost), tile_n=tile_n,
                  distance_dtype=distance_dtype)
    try:
        return _vq_forward_impl(inputs, weight, single_buffer_const=True, **kwargs)
    except Exception:
        # Fallback if this JAX/Mosaic build rejects pipeline_mode=Buffered(1).
        return _vq_forward_impl(inputs, weight, single_buffer_const=False, **kwargs)


def _reference(inputs, weight, commitment_cost):
    """Pure-JAX reference of the PyTorch forward, for a correctness check."""
    B, D, L = inputs.shape
    K = weight.shape[0]
    x = jnp.transpose(inputs, (0, 2, 1)).reshape(-1, D)
    dist = (jnp.sum(x**2, axis=1, keepdims=True) + jnp.sum(weight**2, axis=1)
            - 2.0 * x @ weight.T)
    idx = jnp.argmin(dist, axis=1)
    enc = jax.nn.one_hot(idx, K, dtype=jnp.float32)
    q = enc @ weight
    mse = jnp.mean((q - x) ** 2)
    vq_loss = (1.0 + commitment_cost) * mse
    avg = jnp.mean(enc, axis=0)
    perp = jnp.exp(-jnp.sum(avg * jnp.log(avg + 1e-10)))
    quantized = jnp.transpose(q.reshape(B, L, D), (0, 2, 1))
    return vq_loss, quantized, perp, enc


if __name__ == "__main__":
    # Small shapes consistent with the module: (B, embedding_dim, L).
    num_embeddings = 64
    embedding_dim = 32
    commitment_cost = 0.25
    B, L = 2, 16

    key = jax.random.PRNGKey(0)
    k_w, k_x = jax.random.split(key)
    # nn.Embedding weight ~ U(-1/K, 1/K), deterministic init.
    weight = jax.random.uniform(
        k_w, (num_embeddings, embedding_dim),
        minval=-1.0 / num_embeddings, maxval=1.0 / num_embeddings,
        dtype=jnp.float32)
    inputs = jax.random.normal(k_x, (B, embedding_dim, L), dtype=jnp.float32) * 0.05

    out = vector_quantizer_forward(inputs, weight,
                                   commitment_cost=commitment_cost)
    out = jax.block_until_ready(out)
    vq_loss, quantized, perplexity, encodings = out

    # Sanity check against the pure-JAX reference of the torch forward.
    ref = _reference(inputs, weight, commitment_cost)
    assert jnp.allclose(vq_loss, ref[0], atol=1e-6), (vq_loss, ref[0])
    assert jnp.allclose(quantized, ref[1], atol=1e-6)
    assert jnp.allclose(perplexity, ref[2], atol=1e-5)
    assert jnp.allclose(encodings, ref[3])
    assert encodings.shape == (B * L, num_embeddings)
    assert quantized.shape == inputs.shape

    print("KERNEL_OK")
</pallas_src>

<mosaic_0001>
module attributes {stable_mosaic.version = 11 : i64} {
  func.func @_vq_kernel(%arg0: i32, %arg1: memref<16x128xf32, #tpu.memory_space<vmem>>, %arg2: memref<128x128xf32, #tpu.memory_space<vmem>>, %arg3: memref<1x128xf32, #tpu.memory_space<vmem>>, %arg4: memref<16x128xf32, #tpu.memory_space<vmem>>, %arg5: memref<16x1xi32, #tpu.memory_space<vmem>>, %arg6: memref<1x1x128xf32, #tpu.memory_space<vmem>>, %arg7: memref<1x1x128xf32, #tpu.memory_space<vmem>>) attributes {dimension_semantics = [#tpu.dimension_semantics<parallel>], iteration_bounds = array<i64: 2>, scalar_prefetch = 0 : i64, scratch_operands = 0 : i64, tpu.core_type = #tpu.core_type<tc>, window_params = [{transform_indices = @transform_0, window_bounds = array<i64: 16, 128>}, {pipeline_mode = #tpu.pipeline_mode<synchronous>, transform_indices = @transform_1, window_bounds = array<i64: 128, 128>}, {pipeline_mode = #tpu.pipeline_mode<synchronous>, transform_indices = @transform_2, window_bounds = array<i64: 1, 128>}, {transform_indices = @transform_3, window_bounds = array<i64: 16, 128>}, {transform_indices = @transform_4, window_bounds = array<i64: 16, 1>}, {transform_indices = @transform_5, window_bounds = array<i64: 1, 1, 128>}, {transform_indices = @transform_6, window_bounds = array<i64: 1, 1, 128>}]} {
    %c0 = arith.constant 0 : index
    %c0_0 = arith.constant 0 : index
    %0 = vector.load %arg1[%c0, %c0_0] : memref<16x128xf32, #tpu.memory_space<vmem>>, vector<16x128xf32>
    %c0_1 = arith.constant 0 : index
    %c0_2 = arith.constant 0 : index
    %1 = vector.load %arg2[%c0_1, %c0_2] : memref<128x128xf32, #tpu.memory_space<vmem>>, vector<128x128xf32>
    %c0_3 = arith.constant 0 : index
    %c0_4 = arith.constant 0 : index
    %2 = vector.load %arg3[%c0_3, %c0_4] : memref<1x128xf32, #tpu.memory_space<vmem>>, vector<1x128xf32>
    %cst = arith.constant dense<0.000000e+00> : vector<16x128xf32>
    %3 = tpu.matmul %0, %1, %cst {dimension_numbers = #tpu.dot_dimension_numbers<[1], [1], [0], [0], [0, 0, 1, 0], [], []>} : vector<16x128xf32>, vector<128x128xf32>, vector<16x128xf32> -> vector<16x128xf32>
    %cst_5 = arith.constant 2.000000e+00 : f32
    %4 = vector.broadcast %cst_5 : f32 to vector<16x128xf32>
    %5 = arith.mulf %4, %3 : vector<16x128xf32>
    %6 = vector.broadcast %2 : vector<1x128xf32> to vector<16x128xf32>
    %7 = arith.subf %6, %5 : vector<16x128xf32>
    %cst_6 = arith.constant dense<0x7F800000> : vector<16xf32>
    %8 = vector.multi_reduction <minimumf>, %7, %cst_6 [1] : vector<16x128xf32> to vector<16xf32>
    %9 = vector.shape_cast %8 : vector<16xf32> to vector<16x1xf32>
    %10 = tpu.iota {dimensions = array<i32: 1>} : vector<16x128xi32>
    %11 = vector.broadcast %9 : vector<16x1xf32> to vector<16x128xf32>
    %12 = arith.cmpf ole, %7, %11 : vector<16x128xf32>
    %c128_i32 = arith.constant 128 : i32
    %13 = vector.broadcast %c128_i32 : i32 to vector<16x128xi32>
    %14 = arith.select %12, %10, %13 : vector<16x128xi1>, vector<16x128xi32>
    %cst_7 = arith.constant dense<2147483647> : vector<16xi32>
    %15 = vector.multi_reduction <minsi>, %14, %cst_7 [1] : vector<16x128xi32> to vector<16xi32>
    %16 = vector.shape_cast %15 : vector<16xi32> to vector<16x1xi32>
    %17 = vector.broadcast %16 : vector<16x1xi32> to vector<16x128xi32>
    %18 = arith.cmpi eq, %10, %17 : vector<16x128xi32>
    %19 = arith.extui %18 : vector<16x128xi1> to vector<16x128xi32>
    %20 = arith.sitofp %19 : vector<16x128xi32> to vector<16x128xf32>
    %cst_8 = arith.constant dense<0.000000e+00> : vector<16x128xf32>
    %21 = tpu.matmul %20, %1, %cst_8 {dimension_numbers = #tpu.dot_dimension_numbers<[1], [0], [0], [1], [0, 0, 1, 1], [], []>} : vector<16x128xf32>, vector<128x128xf32>, vector<16x128xf32> -> vector<16x128xf32>
    %c0_9 = arith.constant 0 : index
    %c0_10 = arith.constant 0 : index
    %22 = vector.load %arg4[%c0_9, %c0_10] : memref<16x128xf32, #tpu.memory_space<vmem>>, vector<16x128xf32>
    tpu.vector_store %arg4[%c0_9, %c0_10], %21 {strides = array<i32>} : memref<16x128xf32, #tpu.memory_space<vmem>>, vector<16x128xf32>,
    %c0_11 = arith.constant 0 : index
    %c0_12 = arith.constant 0 : index
    %23 = vector.load %arg5[%c0_11, %c0_12] : memref<16x1xi32, #tpu.memory_space<vmem>>, vector<16x1xi32>
    tpu.vector_store %arg5[%c0_11, %c0_12], %16 {strides = array<i32>} : memref<16x1xi32, #tpu.memory_space<vmem>>, vector<16x1xi32>,
    %c16_i32 = arith.constant 16 : i32
    %24 = arith.muli %arg0, %c16_i32 : i32
    %25 = tpu.iota {dimensions = array<i32: 0>} : vector<16x1xi32>
    %26 = vector.broadcast %24 : i32 to vector<16x1xi32>
    %27 = arith.addi %26, %25 : vector<16x1xi32>
    %c32_i32 = arith.constant 32 : i32
    %28 = vector.broadcast %c32_i32 : i32 to vector<16x1xi32>
    %29 = arith.cmpi slt, %27, %28 : vector<16x1xi32>
    %30 = arith.subf %21, %0 : vector<16x128xf32>
    %cst_13 = arith.constant 0.000000e+00 : f32
    %31 = vector.shape_cast %29 : vector<16x1xi1> to vector<16x1xi1>
    %32 = vector.broadcast %31 : vector<16x1xi1> to vector<16x128xi1>
    %33 = vector.broadcast %cst_13 : f32 to vector<16x128xf32>
    %34 = arith.select %32, %30, %33 : vector<16x128xi1>, vector<16x128xf32>
    %35 = arith.mulf %34, %34 : vector<16x128xf32>
    %cst_14 = arith.constant dense<0.000000e+00> : vector<128xf32>
    %36 = vector.multi_reduction <add>, %35, %cst_14 [0] : vector<16x128xf32> to vector<128xf32>
    %37 = vector.shape_cast %36 : vector<128xf32> to vector<1x128xf32>
    %38 = vector.shape_cast %37 : vector<1x128xf32> to vector<1x1x128xf32>
    %c0_15 = arith.constant 0 : index
    %c0_16 = arith.constant 0 : index
    %c0_17 = arith.constant 0 : index
    %39 = vector.load %arg6[%c0_15, %c0_16, %c0_17] : memref<1x1x128xf32, #tpu.memory_space<vmem>>, vector<1x1x128xf32>
    tpu.vector_store %arg6[%c0_15, %c0_16, %c0_17], %38 {strides = array<i32>} : memref<1x1x128xf32, #tpu.memory_space<vmem>>, vector<1x1x128xf32>,
    %cst_18 = arith.constant 0.000000e+00 : f32
    %40 = vector.shape_cast %29 : vector<16x1xi1> to vector<16x1xi1>
    %41 = vector.broadcast %40 : vector<16x1xi1> to vector<16x128xi1>
    %42 = vector.broadcast %cst_18 : f32 to vector<16x128xf32>
    %43 = arith.select %41, %20, %42 : vector<16x128xi1>, vector<16x128xf32>
    %cst_19 = arith.constant dense<0.000000e+00> : vector<128xf32>
    %44 = vector.multi_reduction <add>, %43, %cst_19 [0] : vector<16x128xf32> to vector<128xf32>
    %45 = vector.shape_cast %44 : vector<128xf32> to vector<1x128xf32>
    %46 = vector.shape_cast %45 : vector<1x128xf32> to vector<1x1x128xf32>
    %c0_20 = arith.constant 0 : index
    %c0_21 = arith.constant 0 : index
    %c0_22 = arith.constant 0 : index
    %47 = vector.load %arg7[%c0_20, %c0_21, %c0_22] : memref<1x1x128xf32, #tpu.memory_space<vmem>>, vector<1x1x128xf32>
    tpu.vector_store %arg7[%c0_20, %c0_21, %c0_22], %46 {strides = array<i32>} : memref<1x1x128xf32, #tpu.memory_space<vmem>>, vector<1x1x128xf32>,
    return
  }
  func.func @transform_0(%arg0: i32) -> (i32, i32) {
    %c0_i32 = arith.constant 0 : i32
    %c0_i32_0 = arith.constant 0 : i32
    return %arg0, %c0_i32 : i32, i32
  }
  func.func @transform_1(%arg0: i32) -> (i32, i32) {
    %c0_i32 = arith.constant 0 : i32
    %c0_i32_0 = arith.constant 0 : i32
    %c0_i32_1 = arith.constant 0 : i32
    return %c0_i32, %c0_i32_0 : i32, i32
  }
  func.func @transform_2(%arg0: i32) -> (i32, i32) {
    %c0_i32 = arith.constant 0 : i32
    %c0_i32_0 = arith.constant 0 : i32
    %c0_i32_1 = arith.constant 0 : i32
    return %c0_i32, %c0_i32_0 : i32, i32
  }
  func.func @transform_3(%arg0: i32) -> (i32, i32) {
    %c0_i32 = arith.constant 0 : i32
    %c0_i32_0 = arith.constant 0 : i32
    return %arg0, %c0_i32 : i32, i32
  }
  func.func @transform_4(%arg0: i32) -> (i32, i32) {
    %c0_i32 = arith.constant 0 : i32
    %c0_i32_0 = arith.constant 0 : i32
    return %arg0, %c0_i32 : i32, i32
  }
  func.func @transform_5(%arg0: i32) -> (i32, i32, i32) {
    %c0_i32 = arith.constant 0 : i32
    %c0_i32_0 = arith.constant 0 : i32
    %c0_i32_1 = arith.constant 0 : i32
    return %arg0, %c0_i32, %c0_i32_0 : i32, i32, i32
  }
  func.func @transform_6(%arg0: i32) -> (i32, i32, i32) {
    %c0_i32 = arith.constant 0 : i32
    %c0_i32_0 = arith.constant 0 : i32
    %c0_i32_1 = arith.constant 0 : i32
    return %arg0, %c0_i32, %c0_i32_0 : i32, i32, i32
  }
}

module attributes {stable_mosaic.version = 11 : i64} {
  func.func @_vq_kernel(%arg0: i32, %arg1: memref<16x128xf32, #tpu.memory_space<vmem>>, %arg2: memref<128x128xf32, #tpu.memory_space<vmem>>, %arg3: memref<1x128xf32, #tpu.memory_space<vmem>>, %arg4: memref<16x128xf32, #tpu.memory_space<vmem>>, %arg5: memref<16x1xi32, #tpu.memory_space<vmem>>, %arg6: memref<1x1x128xf32, #tpu.memory_space<vmem>>, %arg7: memref<1x1x128xf32, #tpu.memory_space<vmem>>) attributes {dimension_semantics = [#tpu.dimension_semantics<parallel>], iteration_bounds = array<i64: 2>, scalar_prefetch = 0 : i64, scratch_operands = 0 : i64, tpu.core_type = #tpu.core_type<tc>, window_params = [{transform_indices = @transform_0, window_bounds = array<i64: 16, 128>}, {pipeline_mode = #tpu.pipeline_mode<synchronous>, transform_indices = @transform_1, window_bounds = array<i64: 128, 128>}, {pipeline_mode = #tpu.pipeline_mode<synchronous>, transform_indices = @transform_2, window_bounds = array<i64: 1, 128>}, {transform_indices = @transform_3, window_bounds = array<i64: 16, 128>}, {transform_indices = @transform_4, window_bounds = array<i64: 16, 1>}, {transform_indices = @transform_5, window_bounds = array<i64: 1, 1, 128>}, {transform_indices = @transform_6, window_bounds = array<i64: 1, 1, 128>}]} {
    %c0 = arith.constant 0 : index
    %c0_0 = arith.constant 0 : index
    %0 = vector.load %arg1[%c0, %c0_0] : memref<16x128xf32, #tpu.memory_space<vmem>>, vector<16x128xf32>
    %c0_1 = arith.constant 0 : index
    %c0_2 = arith.constant 0 : index
    %1 = vector.load %arg2[%c0_1, %c0_2] : memref<128x128xf32, #tpu.memory_space<vmem>>, vector<128x128xf32>
    %c0_3 = arith.constant 0 : index
    %c0_4 = arith.constant 0 : index
    %2 = vector.load %arg3[%c0_3, %c0_4] : memref<1x128xf32, #tpu.memory_space<vmem>>, vector<1x128xf32>
    %cst = arith.constant dense<0.000000e+00> : vector<16x128xf32>
    %3 = tpu.matmul %0, %1, %cst {dimension_numbers = #tpu.dot_dimension_numbers<[1], [1], [0], [0], [0, 0, 1, 0], [], []>} : vector<16x128xf32>, vector<128x128xf32>, vector<16x128xf32> -> vector<16x128xf32>
    %cst_5 = arith.constant 2.000000e+00 : f32
    %4 = vector.broadcast %cst_5 : f32 to vector<16x128xf32>
    %5 = arith.mulf %4, %3 : vector<16x128xf32>
    %6 = vector.broadcast %2 : vector<1x128xf32> to vector<16x128xf32>
    %7 = arith.subf %6, %5 : vector<16x128xf32>
    %cst_6 = arith.constant dense<0x7F800000> : vector<16xf32>
    %8 = vector.multi_reduction <minimumf>, %7, %cst_6 [1] : vector<16x128xf32> to vector<16xf32>
    %9 = vector.shape_cast %8 : vector<16xf32> to vector<16x1xf32>
    %10 = tpu.iota {dimensions = array<i32: 1>} : vector<16x128xi32>
    %11 = vector.broadcast %9 : vector<16x1xf32> to vector<16x128xf32>
    %12 = arith.cmpf ole, %7, %11 : vector<16x128xf32>
    %c128_i32 = arith.constant 128 : i32
    %13 = vector.broadcast %c128_i32 : i32 to vector<16x128xi32>
    %14 = arith.select %12, %10, %13 : vector<16x128xi1>, vector<16x128xi32>
    %cst_7 = arith.constant dense<2147483647> : vector<16xi32>
    %15 = vector.multi_reduction <minsi>, %14, %cst_7 [1] : vector<16x128xi32> to vector<16xi32>
    %16 = vector.shape_cast %15 : vector<16xi32> to vector<16x1xi32>
    %17 = vector.broadcast %16 : vector<16x1xi32> to vector<16x128xi32>
    %18 = arith.cmpi eq, %10, %17 : vector<16x128xi32>
    %19 = arith.extui %18 : vector<16x128xi1> to vector<16x128xi32>
    %20 = arith.sitofp %19 : vector<16x128xi32> to vector<16x128xf32>
    %cst_8 = arith.constant dense<0.000000e+00> : vector<16x128xf32>
    %21 = tpu.matmul %20, %1, %cst_8 {dimension_numbers = #tpu.dot_dimension_numbers<[1], [0], [0], [1], [0, 0, 1, 1], [], []>} : vector<16x128xf32>, vector<128x128xf32>, vector<16x128xf32> -> vector<16x128xf32>
    %c0_9 = arith.constant 0 : index
    %c0_10 = arith.constant 0 : index
    %22 = vector.load %arg4[%c0_9, %c0_10] : memref<16x128xf32, #tpu.memory_space<vmem>>, vector<16x128xf32>
    tpu.vector_store %arg4[%c0_9, %c0_10], %21 {strides = array<i32>} : memref<16x128xf32, #tpu.memory_space<vmem>>, vector<16x128xf32>,
    %c0_11 = arith.constant 0 : index
    %c0_12 = arith.constant 0 : index
    %23 = vector.load %arg5[%c0_11, %c0_12] : memref<16x1xi32, #tpu.memory_space<vmem>>, vector<16x1xi32>
    tpu.vector_store %arg5[%c0_11, %c0_12], %16 {strides = array<i32>} : memref<16x1xi32, #tpu.memory_space<vmem>>, vector<16x1xi32>,
    %c16_i32 = arith.constant 16 : i32
    %24 = arith.muli %arg0, %c16_i32 : i32
    %25 = tpu.iota {dimensions = array<i32: 0>} : vector<16x1xi32>
    %26 = vector.broadcast %24 : i32 to vector<16x1xi32>
    %27 = arith.addi %26, %25 : vector<16x1xi32>
    %c32_i32 = arith.constant 32 : i32
    %28 = vector.broadcast %c32_i32 : i32 to vector<16x1xi32>
    %29 = arith.cmpi slt, %27, %28 : vector<16x1xi32>
    %30 = arith.subf %21, %0 : vector<16x128xf32>
    %cst_13 = arith.constant 0.000000e+00 : f32
    %31 = vector.shape_cast %29 : vector<16x1xi1> to vector<16x1xi1>
    %32 = vector.broadcast %31 : vector<16x1xi1> to vector<16x128xi1>
    %33 = vector.broadcast %cst_13 : f32 to vector<16x128xf32>
    %34 = arith.select %32, %30, %33 : vector<16x128xi1>, vector<16x128xf32>
    %35 = arith.mulf %34, %34 : vector<16x128xf32>
    %cst_14 = arith.constant dense<0.000000e+00> : vector<128xf32>
    %36 = vector.multi_reduction <add>, %35, %cst_14 [0] : vector<16x128xf32> to vector<128xf32>
    %37 = vector.shape_cast %36 : vector<128xf32> to vector<1x128xf32>
    %38 = vector.shape_cast %37 : vector<1x128xf32> to vector<1x1x128xf32>
    %c0_15 = arith.constant 0 : index
    %c0_16 = arith.constant 0 : index
    %c0_17 = arith.constant 0 : index
    %39 = vector.load %arg6[%c0_15, %c0_16, %c0_17] : memref<1x1x128xf32, #tpu.memory_space<vmem>>, vector<1x1x128xf32>
    tpu.vector_store %arg6[%c0_15, %c0_16, %c0_17], %38 {strides = array<i32>} : memref<1x1x128xf32, #tpu.memory_space<vmem>>, vector<1x1x128xf32>,
    %cst_18 = arith.constant 0.000000e+00 : f32
    %40 = vector.shape_cast %29 : vector<16x1xi1> to vector<16x1xi1>
    %41 = vector.broadcast %40 : vector<16x1xi1> to vector<16x128xi1>
    %42 = vector.broadcast %cst_18 : f32 to vector<16x128xf32>
    %43 = arith.select %41, %20, %42 : vector<16x128xi1>, vector<16x128xf32>
    %cst_19 = arith.constant dense<0.000000e+00> : vector<128xf32>
    %44 = vector.multi_reduction <add>, %43, %cst_19 [0] : vector<16x128xf32> to vector<128xf32>
    %45 = vector.shape_cast %44 : vector<128xf32> to vector<1x128xf32>
    %46 = vector.shape_cast %45 : vector<1x128xf32> to vector<1x1x128xf32>
    %c0_20 = arith.constant 0 : index
    %c0_21 = arith.constant 0 : index
    %c0_22 = arith.constant 0 : index
    %47 = vector.load %arg7[%c0_20, %c0_21, %c0_22] : memref<1x1x128xf32, #tpu.memory_space<vmem>>, vector<1x1x128xf32>
    tpu.vector_store %arg7[%c0_20, %c0_21, %c0_22], %46 {strides = array<i32>} : memref<1x1x128xf32, #tpu.memory_space<vmem>>, vector<1x1x128xf32>,
    return
  }
  func.func @transform_0(%arg0: i32) -> (i32, i32) {
    %c0_i32 = arith.constant 0 : i32
    %c0_i32_0 = arith.constant 0 : i32
    return %arg0, %c0_i32 : i32, i32
  }
  func.func @transform_1(%arg0: i32) -> (i32, i32) {
    %c0_i32 = arith.constant 0 : i32
    %c0_i32_0 = arith.constant 0 : i32
    %c0_i32_1 = arith.constant 0 : i32
    return %c0_i32, %c0_i32_0 : i32, i32
  }
  func.func @transform_2(%arg0: i32) -> (i32, i32) {
    %c0_i32 = arith.constant 0 : i32
    %c0_i32_0 = arith.constant 0 : i32
    %c0_i32_1 = arith.constant 0 : i32
    return %c0_i32, %c0_i32_0 : i32, i32
  }
  func.func @transform_3(%arg0: i32) -> (i32, i32) {
    %c0_i32 = arith.constant 0 : i32
    %c0_i32_0 = arith.constant 0 : i32
    return %arg0, %c0_i32 : i32, i32
  }
  func.func @transform_4(%arg0: i32) -> (i32, i32) {
    %c0_i32 = arith.constant 0 : i32
    %c0_i32_0 = arith.constant 0 : i32
    return %arg0, %c0_i32 : i32, i32
  }
  func.func @transform_5(%arg0: i32) -> (i32, i32, i32) {
    %c0_i32 = arith.constant 0 : i32
    %c0_i32_0 = arith.constant 0 : i32
    %c0_i32_1 = arith.constant 0 : i32
    return %arg0, %c0_i32, %c0_i32_0 : i32, i32, i32
  }
  func.func @transform_6(%arg0: i32) -> (i32, i32, i32) {
    %c0_i32 = arith.constant 0 : i32
    %c0_i32_0 = arith.constant 0 : i32
    %c0_i32_1 = arith.constant 0 : i32
    return %arg0, %c0_i32, %c0_i32_0 : i32, i32, i32
  }
}

</mosaic_0001>

<bundles_post_ra>
// kernel: _vq_forward_impl.1
= control target key start
LH: loop header
LB: loop body
LE: loop exit
PB: predicated region body
PF: predicated region fallthrough
CT: control target
= control target key end

     0   :  { %12 = vsyncpa [#allocation3], 0  ;;  %s1245_s0 = inlined_call_operand.vmem [shape: f32[32,128], index: 0, kind: input, shape index: {}]   ;;  %s1246_s1 = inlined_call_operand.vmem [shape: f32[128,128], index: 1, kind: input, shape index: {}]   ;;  %s1247_s2 = inlined_call_operand.vmem [shape: f32[1,128], index: 2, kind: input, shape index: {}]   ;;  %s1248_s3 = inlined_call_operand.hbm [shape: f32[32,128], index: 3, kind: output, shape index: {0}]   ;;  %s1249_s4 = inlined_call_operand.vmem [shape: s32[32,1], index: 4, kind: output, shape index: {1}]   ;;  %s1250_s5 = inlined_call_operand.vmem [shape: f32[2,1,128], index: 5, kind: output, shape index: {2}]   ;;  %s1251_s6 = inlined_call_operand.vmem [shape: f32[2,1,128], index: 6, kind: output, shape index: {3}]  }
   0x1   :  { %14 = vsyncpa [#allocation3 + $0x1], 0  ;;  %s1046_s21 = smov 0   ;;  %s1048_s22 = smov 0  }
   0x2   :  { %s1050_s23 = smov 0   ;;  %s1052_s24 = smov 0  }
   0x3 LB: > { %s1067_s25 = sadd.s32 4294967295, %s1004_s24   ;;  %s708_s26 = sadd.s32 4294967294, %s1004_s24   ;;  %s1004_s24 = sphi %s1052_s24, %s1257_s24   ;;  %s1000_s23 = sphi %s1050_s23, %s1256_s23   ;;  %s996_s22 = sphi %s1048_s22, %s1255_s22   ;;  %s992_s21 = sphi %s1046_s21, %s1254_s21  }
   0x4   : > { %s1071_s27 = sadd.s32 1, %s1004_s24   ;;  %s95_s28 = sadd.s32 1, %s1000_s23 }
   0x5   : > { %s92_s29 = ssub.s32 %s1004_s24, %s1071_s27  ;;  %p105_p0 = scmp.ne.s32.totalorder %s1000_s23, %s996_s22 }
   0x6   : > { %p93_p1 = scmp.eq.s32.totalorder %s92_s29, 0  ;;  %p106_p2 = scmp.eq.s32.totalorder %s1067_s25, 1 }
   0x7   : > { %p111_p3 = scmp.ne.s32.totalorder %s996_s22, %s992_s21  ;;  %p112_p4 = scmp.eq.s32.totalorder %s708_s26, 1 }
   0x8   : > { %s1082_s30 = scalar_select %p93_p1, %s1000_s23, %s95_s28  }
   0x9   : > { %p1084_p5 = por %p106_p2, %p105_p0  ;;  %p1088_p6 = por %p112_p4, %p111_p3 }
   0xa   : > { %p711_p7 = scmp.ge.s32.totalorder %s1004_s24, 1  ;;  %p223_p8 = scmp.lt.s32.totalorder %s1004_s24, 3 }
   0xc   : > { %p224_p9 = pnand %p711_p7, %p223_p8 }
   0xd   : > { %v285_v0 = vld [vmem:[%s1246_s1] sm:$0xff] (!%p224_p9)  ;;  %v286_v1 = vld [vmem:[%s1246_s1 + $0x8] sm:$0xff] (!%p224_p9)  ;;  %v287_v2 = vld [vmem:[%s1246_s1 + $0x10] sm:$0xff] (!%p224_p9)  ;;  %s713_s15 = sshll.u32 (!%p224_p9), %s1067_s25, 1  ;;  %v391_v33 = vlaneseq (!%p224_p9)  ;;  %vm508_vm4 = vcmask (!%p224_p9), 7168   ;;  %p277_p11 = scmp.lt.s32.totalorder (!%p224_p9), %s1067_s25, 1 }
   0xe   : > { %227 = sbr.rel (%p224_p9) target bundleno = 985 (0x3d9), region = 32  ;;  %v835_v3 = vpack.c.bf16 (!%p224_p9), %v286_v1, %v285_v0  ;;  %v288_v4 = vld [vmem:[%s1246_s1 + $0x18] sm:$0xff] (!%p224_p9)  ;;  %p265_p10 = scmp.lt.s32.totalorder (!%p224_p9), %s713_s15, 3  ;;  %v289_v6 = vld [vmem:[%s1246_s1 + $0x20] sm:$0xff] (!%p224_p9)  ;;  %v290_v7 = vld [vmem:[%s1246_s1 + $0x28] sm:$0xff] (!%p224_p9)  ;;  %v1006_v1 = vmov (!%p224_p9), 1.0  }
   0xf   : > { %v839_v5 = vpack.c.bf16 (!%p224_p9), %v288_v4, %v287_v2  ;;  %v843_v8 = vpack.c.bf16 (!%p224_p9), %v290_v7, %v289_v6  ;;  %v291_v10 = vld [vmem:[%s1246_s1 + $0x30] sm:$0xff] (!%p224_p9)  ;;  %v292_v11 = vld [vmem:[%s1246_s1 + $0x38] sm:$0xff] (!%p224_p9)  ;;  %v293_v13 = vld [vmem:[%s1246_s1 + $0x40] sm:$0xff] (!%p224_p9)  ;;  %v392_v34 = vand.u32 (!%p224_p9), 127, %v391_v33  ;;  %v513_v52 = vshrl.u32 (!%p224_p9), %v391_v33, 7  ;;  %s244_s14 = sand.u32 (!%p224_p9), 1, %s996_s22  }
  0x10   : > { %836 = vmatprep.subr.bf16.mxu0 (!%p224_p9), %v835_v3  ;;  %868 = vmatprep.subr.bf16.mxu1 (!%p224_p9), %v835_v3  ;;  %v847_v12 = vpack.c.bf16 (!%p224_p9), %v292_v11, %v291_v10  ;;  %v294_v14 = vld [vmem:[%s1246_s1 + $0x48] sm:$0xff] (!%p224_p9)  ;;  %v295_v16 = vld [vmem:[%s1246_s1 + $0x50] sm:$0xff] (!%p224_p9)  ;;  %v296_v17 = vld [vmem:[%s1246_s1 + $0x58] sm:$0xff] (!%p224_p9)  ;;  %s712_s16 = sshll.u32 (!%p224_p9), %s244_s14, 4  ;;  %s728_s19 = sshll.u32 (!%p224_p9), %s1067_s25, 8 }
  0x11   : > { %838 = vmatpush3.bf16.xpose.msra.mxu0 (!%p224_p9), %v835_v3  ;;  %870 = vmatpush3.bf16.msra.mxu1 (!%p224_p9), %v835_v3  ;;  %v851_v15 = vpack.c.bf16 (!%p224_p9), %v294_v14, %v293_v13  ;;  %v855_v18 = vpack.c.bf16 (!%p224_p9), %v296_v17, %v295_v16  ;;  %v297_v19 = vld [vmem:[%s1246_s1 + $0x60] sm:$0xff] (!%p224_p9)  ;;  %v298_v20 = vld [vmem:[%s1246_s1 + $0x68] sm:$0xff] (!%p224_p9)  ;;  %v299_v22 = vld [vmem:[%s1246_s1 + $0x70] sm:$0xff] (!%p224_p9)  ;;  %v514_v54 = vadd.s32 (!%p224_p9), 8, %v513_v52  ;;  %v1007_v3 = vmov (!%p224_p9), 0.0   ;;  %s246_s17 = scalar_lea.vmem (!%p224_p9), [#allocation2], %s712_s16 }
  0x12   : > { %840 = vmatprep.subr.bf16.mxu0 (!%p224_p9), %v839_v5  ;;  %872 = vmatprep.subr.bf16.mxu1 (!%p224_p9), %v839_v5  ;;  %v859_v21 = vpack.c.bf16 (!%p224_p9), %v298_v20, %v297_v19  ;;  %v300_v23 = vld [vmem:[%s1246_s1 + $0x78] sm:$0xff] (!%p224_p9)  ;;  %v717_v28 = vld [vmem:[%s1247_s2] ss:$0 sm:$0xff] (!%p224_p9)  ;;  %s573_s18 = sshll.u32 (!%p224_p9), %s246_s17, 4  ;;  %s1008_s9 = smov (!%p224_p9), [#allocation2]   ;;  %s1188_s18 = int_to_ptr.vmem [resolvable:$true] %s573_s18 }
  0x13   : > { %v863_v24 = vpack.c.bf16 (!%p224_p9), %v300_v23, %v299_v22  ;;  %s942_s29 = scalar_lea.vmem (!%p224_p9), %s1188_s18, 256 }
  0x14   : > { %p943_p12 = scmp.ne.s32.totalorder (!%p224_p9), %s1188_s18, %s942_s29 }
  0x15   : > { %s1259_s15 = smov (!%p265_p10, %s713_s15), 3  ;;  %874 = vmatpush3.bf16.msra.mxu1 %v839_v5 }
  0x16   : > { %s714_s28 = sshll.u32 %s1259_s15, 3  ;;  %876 = vmatprep.subr.bf16.mxu1 %v843_v8  ;;  %p944_p13 = pnand %p943_p12, %p1084_p5 }
  0x17   : > { %s1121_s10 = scalar_lea.vmem %s1245_s0, %s714_s28  ;;  %s275_s11 = scalar_lea.vmem %s1249_s4, %s714_s28 }
  0x18   : > { %v1124_v9 = vld [vmem:[%s1121_s10] sm:$0xff]  ;;  %v1158_v25 = vld [vmem:[%s1121_s10 + $0x8] sm:$0xff]  ;;  %s722_s10 = sshll.u32 %s1067_s25, 4  ;;  %p945_p0 = pneg %p944_p13 }
  0x19   : > { %797 = vmatprep.mubr.f32.mxu0 %v1124_v9  ;;  %842 = vmatpush3.bf16.xpose.msra.mxu0 %v839_v5  ;;  %v515_v58 = vstv %s722_s10  ;;  %s1180_s15 = scalar_select %p277_p11, %s1067_s25, 1 }
  0x1a   : > { %878 = vmatpush3.bf16.msra.mxu1 %v843_v8  ;;  %844 = vmatprep.subr.bf16.mxu0 %v843_v8  ;;  %v1170_v61 = vadd.s32 %v515_v58, %v513_v52  ;;  %v517_v62 = vadd.s32 %v515_v58, %v514_v54  ;;  %s1193_s10 = scalar_lea.hbm %s1248_s3, %s728_s19  ;;  %s1198_s25 = scalar_lea.sflag [#allocation3], %s244_s14 }
  0x1b   : > { %880 = vmatprep.subr.bf16.mxu1 %v847_v12  ;;  %s282_s13 = scalar_lea.vmem %s1251_s6, %s1180_s15 }
  0x1c   : > { %vm518_vm6 = vcmp.lt.s32.totalorder %v1170_v61, 32  ;;  %vm519_vm7 = vcmp.lt.s32.totalorder %v517_v62, 32 }
  0x1e   : > { %882 = vmatpush3.bf16.msra.mxu1 %v847_v12 }
  0x1f   : > { %884 = vmatprep.subr.bf16.mxu1 %v851_v15 }
  0x21   : > { %846 = vmatpush3.bf16.xpose.msra.mxu0 %v843_v8 }
  0x22   : > { %886 = vmatpush3.bf16.msra.mxu1 %v851_v15  ;;  %848 = vmatprep.subr.bf16.mxu0 %v847_v12 }
  0x23   : > { %888 = vmatprep.subr.bf16.mxu1 %v855_v18 }
  0x26   : > { %890 = vmatpush3.bf16.msra.mxu1 %v855_v18 }
  0x27   : > { %892 = vmatprep.subr.bf16.mxu1 %v859_v21 }
  0x29   : > { %850 = vmatpush3.bf16.xpose.msra.mxu0 %v847_v12 }
  0x2a   : > { %894 = vmatpush3.bf16.msra.mxu1 %v859_v21  ;;  %852 = vmatprep.subr.bf16.mxu0 %v851_v15 }
  0x2b   : > { %896 = vmatprep.subr.bf16.mxu1 %v863_v24 }
  0x2e   : > { %898 = vmatpush3.bf16.msra.mxu1 %v863_v24 }
  0x31   : > { %854 = vmatpush3.bf16.xpose.msra.mxu0 %v851_v15 }
  0x32   : > { %856 = vmatprep.subr.bf16.mxu0 %v855_v18 }
  0x39   : > { %858 = vmatpush3.bf16.xpose.msra.mxu0 %v855_v18 }
  0x3a   : > { %860 = vmatprep.subr.bf16.mxu0 %v859_v21 }
  0x41   : > { %862 = vmatpush3.bf16.xpose.msra.mxu0 %v859_v21 }
  0x42   : > { %864 = vmatprep.subr.bf16.mxu0 %v863_v24 }
  0x49   : > { %866 = vmatpush3.bf16.xpose.msra.mxu0 %v863_v24 }
  0x50   : > { %798 = vmatmul.mubr.f32.vlgmr.msra.gmra.mrb[0].mxu0 %v1158_v25 }
 0x123   : > { %v799_v26 = vpop.f32.mrb[0].mxu0 }
 0x124   : > { %v368_v27 = vpop.f32.mrb[1].mxu0  ;;  %v378_v30 = vmul.f32 2.0, %v799_v26 }
 0x125   : > { %v377_v29 = vmul.f32 2.0, %v368_v27 }
 0x126   : > { %v386_v32 = vsub.f32 %v717_v28, %v378_v30 }
 0x127   : > { %v385_v31 = vsub.f32 %v717_v28, %v377_v29 }
 0x129   : > { %387 = vmin.xlane.f32.xlu0 %v385_v31 }
 0x12d   : > { %389 = vmin.xlane.f32.xlu0 %v386_v32 }
 0x1b6   : > { %v388_v35 = vpop.xlane.xlu0 %387 }
 0x1b7   : > { %vm393_vm0 = vcmp.le.f32.partialorder %v385_v31, %v388_v35 }
 0x1b8   : > { %v395_v36 = vsel %vm393_vm0, %v392_v34, 128 }
 0x1b9   : > { %v398_v37 = vshra.s32 %v395_v36, 16  ;;  %v397_v43 = vand.u32 65535, %v395_v36 }
 0x1ba   : > { %v390_v38 = vpop.xlane.xlu0 %389 }
 0x1bb   : > { %vm394_vm1 = vcmp.le.f32.partialorder %v386_v32, %v390_v38  ;;  %v400_v39 = vcvt.s32.f32 %v398_v37  ;;  %v399_v46 = vcvt.s32.f32 %v397_v43 }
 0x1bc   : > { %v396_v40 = vsel %vm394_vm1, %v392_v34, 128 }
 0x1bd   : > { %401 = vmin.xlane.f32.xlu1 %v400_v39  ;;  %v412_v41 = vshra.s32 %v396_v40, 16  ;;  %v411_v44 = vand.u32 65535, %v396_v40 }
 0x1bf   : > { %v414_v42 = vcvt.s32.f32 %v412_v41  ;;  %v413_v49 = vcvt.s32.f32 %v411_v44 }
 0x1c1   : > { %415 = vmin.xlane.f32.xlu1 %v414_v42 }
 0x24a   : > { %v402_v45 = vpop.xlane.xlu1 %401 }
 0x24b   : > { %vm403_vm2 = vcmp.eq.f32.partialorder %v400_v39, %v402_v45  ;;  %v408_v51 = vcvt.f32.s32 %v402_v45 }
 0x24c   : > { %v404_v47 = vsel %vm403_vm2, %v399_v46, inf }
 0x24d   : > { %405 = vmin.xlane.f32.xlu0 %v404_v47  ;;  %v409_v55 = vshll.u32 %v408_v51, 16 }
 0x24e   : > { %v416_v48 = vpop.xlane.xlu1 %415 }
 0x24f   : > { %vm417_vm3 = vcmp.eq.f32.partialorder %v414_v42, %v416_v48  ;;  %v422_v56 = vcvt.f32.s32 %v416_v48 }
 0x250   : > { %v418_v50 = vsel %vm417_vm3, %v413_v49, inf }
 0x251   : > { %419 = vmin.xlane.f32.xlu1 %v418_v50  ;;  %v423_v63 = vshll.u32 %v422_v56, 16 }
 0x2da   : > { %v406_v53 = vpop.xlane.xlu0 %405 }
 0x2db   : > { %v407_v57 = vcvt.f32.s32 %v406_v53 }
 0x2dd   : > { %v410_v59 = vadd.s32 %v409_v55, %v407_v57 }
 0x2de   : > { %v420_v60 = vpop.xlane.xlu1 %419 }
 0x2df   : > { %509 = vst.msk [vmem:[%s275_s11] sm:$0xff] %vm508_vm4, %v410_v59  ;;  %v421_v0 = vcvt.f32.s32 %v420_v60  ;;  %vm425_vm5 = vcmp.eq.s32.totalorder %v392_v34, %v410_v59 }
 0x2e0   : > { %832 = vmatprep.mubr.msk.f32.mxu1 %vm425_vm5, %v1006_v1  ;;  %v718_v4 = vsel %vm425_vm5, 1.0, %v1007_v3 }
 0x2e1   : > { %v424_v2 = vadd.s32 %v423_v63, %v421_v0  ;;  %v538_v6 = vsel %vm518_vm6, %v718_v4, 0.0 }
 0x2e3   : > { %vm426_vm8 = vcmp.eq.s32.totalorder %v392_v34, %v424_v2  ;;  %510 = vst.msk [vmem:[%s275_s11 + $0x8] sm:$0xff] %vm508_vm4, %v424_v2  ;;  %s946_s11 = sshll.u32 %s1008_s9, 4  ;;  %s947_s11 = int_to_ptr.vmem [resolvable:$false] %s946_s11 }
 0x2e4   : > { %v719_v5 = vsel %vm426_vm8, 1.0, %v1007_v3  ;;  %833 = vmatmul.mubr.msk.f32.vlgmr.msra.gmra.mrb[0].mxu1 %vm426_vm8, %v1006_v1  ;;  %s948_s28 = scalar_lea.vmem %s947_s11, 512  ;;  %p949_p1 = scmp.lt.s32.totalorder %s1188_s18, %s947_s11 }
 0x2e5   : > { %v539_v7 = vsel %vm519_vm7, %v719_v5, 0.0  ;;  %p950_p2 = scmp.lt.s32.totalorder %s948_s28, %s942_s29 }
 0x2e6   : > { %v540_v8 = vadd.f32 %v539_v7, %v538_v6 }
 0x2e7   : > { %p951_p3 = por %p950_p2, %p949_p1 }
 0x2e8   : > { %v541_v10 = vrot.slane %v540_v8, 4 }
 0x2e9   : > { %p952_p4 = pnand %p951_p3, %p945_p0 }
 0x2ea   : > { %v542_v11 = vadd.f32 %v541_v10, %v540_v8 }
 0x2ec   : > { %v543_v12 = vrot.slane %v542_v11, 2 }
 0x2ee   : > { %v544_v13 = vadd.f32 %v543_v12, %v542_v11 }
 0x2f0   : > { %v545_v14 = vrot.slane %v544_v13, 1 }
 0x2f2   : > { %v546_v15 = vadd.f32 %v545_v14, %v544_v13 }
 0x2f4   : > { %547 = vst [vmem:[%s282_s13] sm:$0x1] %v546_v15 }
 0x3b7   : > { %v834_v16 = vpop.f32.mrb[0].mxu1 }
 0x3b8   : > { %507 = vst [vmem:[%s246_s17 + $0x8] sm:$0xff] %v834_v16  ;;  %v521_v17 = vsub.f32 %v834_v16, %v1158_v25  ;;  %v497_v18 = vpop.f32.mrb[1].mxu1 }
 0x3b9   : > { %506 = vst [vmem:[%s246_s17] sm:$0xff] %v497_v18  ;;  %v520_v19 = vsub.f32 %v497_v18, %v1124_v9 }
 0x3ba   : > { %v527_v20 = vsel %vm519_vm7, %v521_v17, 0.0 }
 0x3bb   : > { %955 = shalt.err (!%p952_p4)
}
 0x3bc   : > { %s956_s12 = scalar_lea.hbm %s1193_s10, 256  ;;  %s960_s16 = scalar_lea.hbm %s1248_s3, 512 }
 0x3bd   : > { %p957_p7 = scmp.ne.s32.totalorder %s1193_s10, %s956_s12  ;;  %p961_p10 = scmp.lt.u32.totalorder %s1193_s10, %s1248_s3 }
 0x3be   : > { %p962_p11 = scmp.lt.u32.totalorder %s960_s16, %s956_s12  ;;  %p964_p13 = scmp.lt.u32.totalorder %s956_s12, %s1193_s10 }
 0x3bf   : > { %p958_p8 = pnand %p957_p7, %p1084_p5 }
 0x3c0   : > { %p963_p12 = por %p962_p11, %p961_p10 }
 0x3c1   : > { %p959_p9 = pneg %p958_p8 }
 0x3c2   : > { %p965_p0 = por %p964_p13, %p963_p12 }
 0x3c4   : > { %p966_p1 = pnand %p965_p0, %p959_p9 }
 0x3c6   : > { %969 = shalt.err (!%p966_p1)
}
 0x3c7   : > { %s1009_s20 = smov 128   ;;  %s1010_s26 = smov 8   ;;  %v529_v9 = vmul.f32 %v527_v20, %v527_v20  ;;  %v526_v21 = vsel %vm518_vm6, %v520_v19, 0.0 }
 0x3c8   : > { %899 = dma.vmem_to_hbm [thread:$0]  (%p1084_p5), %s1188_s18, 256, %s1193_s10, %s1198_s25, %s1009_s20, %s1009_s20, %s1010_s26   ;;  %v528_v22 = vmul.f32 %v526_v21, %v526_v21 }
 0x3c9   : > { %s279_s11 = scalar_lea.vmem %s1250_s5, %s1180_s15 }
 0x3ca   : > { %v530_v23 = vadd.f32 %v529_v9, %v528_v22 }
 0x3cc   : > { %v531_v24 = vrot.slane %v530_v23, 4 }
 0x3ce   : > { %v532_v25 = vadd.f32 %v531_v24, %v530_v23 }
 0x3d0   : > { %v533_v26 = vrot.slane %v532_v25, 2 }
 0x3d2   : > { %v534_v27 = vadd.f32 %v533_v26, %v532_v25 }
 0x3d4   : > { %v535_v28 = vrot.slane %v534_v27, 1 }
 0x3d6   : > { %v536_v29 = vadd.f32 %v535_v28, %v534_v27 }
 0x3d8   : > { %537 = vst [vmem:[%s279_s11] sm:$0x1] %v536_v29 }
 0x3d9 PF: > { %p905_p5 = scmp.ge.s32.totalorder %s1004_s24, 2  ;;  %s598_s7 = sand.u32 1, %s992_s21  }
 0x3da   : > { %s599_s18 = scalar_lea.sflag [#allocation3], %s598_s7 }
 0x3db   : > { %p902_p2 = pnand %p905_p5, %p1088_p6 }
 0x3dd   : > { %987 = dma.done.wait (!%p902_p2), %s599_s18, 256  }
 0x3de   : > { %989 = vsyncadd (!%p902_p2), %s599_s18, 4294967040  ;;  %p17_p3 = scmp.ge.s32.totalorder %s1071_s27, 4   ;;  %s1254_s21 = smov %s996_s22 }
 0x3df   : > { %s1255_s22 = smov %s1000_s23  ;;  %s1256_s23 = smov %s1082_s30 }
 0x3e0   : > { %s1257_s24 = smov %s1071_s27  ;;  %19 = sbr.rel (!%p17_p3) target bundleno = 3 (0x3), region = 103 }
 0x3e7   :  { %624 = vsyncpa [#allocation3], 1 }
 0x3e8   :  { %626 = vsyncpa [#allocation3 + $0x1], 1 }

// kernel: _vq_forward_impl.1
= control target key start
LH: loop header
LB: loop body
LE: loop exit
PB: predicated region body
PF: predicated region fallthrough
CT: control target
= control target key end

     0   :  { %12 = vsyncpa [#allocation3], 0  ;;  %s1245_s0 = inlined_call_operand.vmem [shape: f32[32,128], index: 0, kind: input, shape index: {}]   ;;  %s1246_s1 = inlined_call_operand.vmem [shape: f32[128,128], index: 1, kind: input, shape index: {}]   ;;  %s1247_s2 = inlined_call_operand.vmem [shape: f32[1,128], index: 2, kind: input, shape index: {}]   ;;  %s1248_s3 = inlined_call_operand.hbm [shape: f32[32,128], index: 3, kind: output, shape index: {0}]   ;;  %s1249_s4 = inlined_call_operand.vmem [shape: s32[32,1], index: 4, kind: output, shape index: {1}]   ;;  %s1250_s5 = inlined_call_operand.vmem [shape: f32[2,1,128], index: 5, kind: output, shape index: {2}]   ;;  %s1251_s6 = inlined_call_operand.vmem [shape: f32[2,1,128], index: 6, kind: output, shape index: {3}]  }
   0x1   :  { %14 = vsyncpa [#allocation3 + $0x1], 0  ;;  %s1046_s21 = smov 0   ;;  %s1048_s22 = smov 0  }
   0x2   :  { %s1050_s23 = smov 0   ;;  %s1052_s24 = smov 0  }
   0x3 LB: > { %s1067_s25 = sadd.s32 4294967295, %s1004_s24   ;;  %s708_s26 = sadd.s32 4294967294, %s1004_s24   ;;  %s1004_s24 = sphi %s1052_s24, %s1257_s24   ;;  %s1000_s23 = sphi %s1050_s23, %s1256_s23   ;;  %s996_s22 = sphi %s1048_s22, %s1255_s22   ;;  %s992_s21 = sphi %s1046_s21, %s1254_s21  }
   0x4   : > { %s1071_s27 = sadd.s32 1, %s1004_s24   ;;  %s95_s28 = sadd.s32 1, %s1000_s23 }
   0x5   : > { %s92_s29 = ssub.s32 %s1004_s24, %s1071_s27  ;;  %p105_p0 = scmp.ne.s32.totalorder %s1000_s23, %s996_s22 }
   0x6   : > { %p93_p1 = scmp.eq.s32.totalorder %s92_s29, 0  ;;  %p106_p2 = scmp.eq.s32.totalorder %s1067_s25, 1 }
   0x7   : > { %p111_p3 = scmp.ne.s32.totalorder %s996_s22, %s992_s21  ;;  %p112_p4 = scmp.eq.s32.totalorder %s708_s26, 1 }
   0x8   : > { %s1082_s30 = scalar_select %p93_p1, %s1000_s23, %s95_s28  }
   0x9   : > { %p1084_p5 = por %p106_p2, %p105_p0  ;;  %p1088_p6 = por %p112_p4, %p111_p3 }
   0xa   : > { %p711_p7 = scmp.ge.s32.totalorder %s1004_s24, 1  ;;  %p223_p8 = scmp.lt.s32.totalorder %s1004_s24, 3 }
   0xc   : > { %p224_p9 = pnand %p711_p7, %p223_p8 }
   0xd   : > { %v285_v0 = vld [vmem:[%s1246_s1] sm:$0xff] (!%p224_p9)  ;;  %v286_v1 = vld [vmem:[%s1246_s1 + $0x8] sm:$0xff] (!%p224_p9)  ;;  %v287_v2 = vld [vmem:[%s1246_s1 + $0x10] sm:$0xff] (!%p224_p9)  ;;  %s713_s15 = sshll.u32 (!%p224_p9), %s1067_s25, 1  ;;  %v391_v33 = vlaneseq (!%p224_p9)  ;;  %vm508_vm4 = vcmask (!%p224_p9), 7168   ;;  %p277_p11 = scmp.lt.s32.totalorder (!%p224_p9), %s1067_s25, 1 }
   0xe   : > { %227 = sbr.rel (%p224_p9) target bundleno = 985 (0x3d9), region = 32  ;;  %v835_v3 = vpack.c.bf16 (!%p224_p9), %v286_v1, %v285_v0  ;;  %v288_v4 = vld [vmem:[%s1246_s1 + $0x18] sm:$0xff] (!%p224_p9)  ;;  %p265_p10 = scmp.lt.s32.totalorder (!%p224_p9), %s713_s15, 3  ;;  %v289_v6 = vld [vmem:[%s1246_s1 + $0x20] sm:$0xff] (!%p224_p9)  ;;  %v290_v7 = vld [vmem:[%s1246_s1 + $0x28] sm:$0xff] (!%p224_p9)  ;;  %v1006_v1 = vmov (!%p224_p9), 1.0  }
   0xf   : > { %v839_v5 = vpack.c.bf16 (!%p224_p9), %v288_v4, %v287_v2  ;;  %v843_v8 = vpack.c.bf16 (!%p224_p9), %v290_v7, %v289_v6  ;;  %v291_v10 = vld [vmem:[%s1246_s1 + $0x30] sm:$0xff] (!%p224_p9)  ;;  %v292_v11 = vld [vmem:[%s1246_s1 + $0x38] sm:$0xff] (!%p224_p9)  ;;  %v293_v13 = vld [vmem:[%s1246_s1 + $0x40] sm:$0xff] (!%p224_p9)  ;;  %v392_v34 = vand.u32 (!%p224_p9), 127, %v391_v33  ;;  %v513_v52 = vshrl.u32 (!%p224_p9), %v391_v33, 7  ;;  %s244_s14 = sand.u32 (!%p224_p9), 1, %s996_s22  }
  0x10   : > { %836 = vmatprep.subr.bf16.mxu0 (!%p224_p9), %v835_v3  ;;  %868 = vmatprep.subr.bf16.mxu1 (!%p224_p9), %v835_v3  ;;  %v847_v12 = vpack.c.bf16 (!%p224_p9), %v292_v11, %v291_v10  ;;  %v294_v14 = vld [vmem:[%s1246_s1 + $0x48] sm:$0xff] (!%p224_p9)  ;;  %v295_v16 = vld [vmem:[%s1246_s1 + $0x50] sm:$0xff] (!%p224_p9)  ;;  %v296_v17 = vld [vmem:[%s1246_s1 + $0x58] sm:$0xff] (!%p224_p9)  ;;  %s712_s16 = sshll.u32 (!%p224_p9), %s244_s14, 4  ;;  %s728_s19 = sshll.u32 (!%p224_p9), %s1067_s25, 8 }
  0x11   : > { %838 = vmatpush3.bf16.xpose.msra.mxu0 (!%p224_p9), %v835_v3  ;;  %870 = vmatpush3.bf16.msra.mxu1 (!%p224_p9), %v835_v3  ;;  %v851_v15 = vpack.c.bf16 (!%p224_p9), %v294_v14, %v293_v13  ;;  %v855_v18 = vpack.c.bf16 (!%p224_p9), %v296_v17, %v295_v16  ;;  %v297_v19 = vld [vmem:[%s1246_s1 + $0x60] sm:$0xff] (!%p224_p9)  ;;  %v298_v20 = vld [vmem:[%s1246_s1 + $0x68] sm:$0xff] (!%p224_p9)  ;;  %v299_v22 = vld [vmem:[%s1246_s1 + $0x70] sm:$0xff] (!%p224_p9)  ;;  %v514_v54 = vadd.s32 (!%p224_p9), 8, %v513_v52  ;;  %v1007_v3 = vmov (!%p224_p9), 0.0   ;;  %s246_s17 = scalar_lea.vmem (!%p224_p9), [#allocation2], %s712_s16 }
  0x12   : > { %840 = vmatprep.subr.bf16.mxu0 (!%p224_p9), %v839_v5  ;;  %872 = vmatprep.subr.bf16.mxu1 (!%p224_p9), %v839_v5  ;;  %v859_v21 = vpack.c.bf16 (!%p224_p9), %v298_v20, %v297_v19  ;;  %v300_v23 = vld [vmem:[%s1246_s1 + $0x78] sm:$0xff] (!%p224_p9)  ;;  %v717_v28 = vld [vmem:[%s1247_s2] ss:$0 sm:$0xff] (!%p224_p9)  ;;  %s573_s18 = sshll.u32 (!%p224_p9), %s246_s17, 4  ;;  %s1008_s9 = smov (!%p224_p9), [#allocation2]   ;;  %s1188_s18 = int_to_ptr.vmem [resolvable:$true] %s573_s18 }
  0x13   : > { %v863_v24 = vpack.c.bf16 (!%p224_p9), %v300_v23, %v299_v22  ;;  %s942_s29 = scalar_lea.vmem (!%p224_p9), %s1188_s18, 256 }
  0x14   : > { %p943_p12 = scmp.ne.s32.totalorder (!%p224_p9), %s1188_s18, %s942_s29 }
  0x15   : > { %s1259_s15 = smov (!%p265_p10, %s713_s15), 3  ;;  %874 = vmatpush3.bf16.msra.mxu1 %v839_v5 }
  0x16   : > { %s714_s28 = sshll.u32 %s1259_s15, 3  ;;  %876 = vmatprep.subr.bf16.mxu1 %v843_v8  ;;  %p944_p13 = pnand %p943_p12, %p1084_p5 }
  0x17   : > { %s1121_s10 = scalar_lea.vmem %s1245_s0, %s714_s28  ;;  %s275_s11 = scalar_lea.vmem %s1249_s4, %s714_s28 }
  0x18   : > { %v1124_v9 = vld [vmem:[%s1121_s10] sm:$0xff]  ;;  %v1158_v25 = vld [vmem:[%s1121_s10 + $0x8] sm:$0xff]  ;;  %s722_s10 = sshll.u32 %s1067_s25, 4  ;;  %p945_p0 = pneg %p944_p13 }
  0x19   : > { %797 = vmatprep.mubr.f32.mxu0 %v1124_v9  ;;  %842 = vmatpush3.bf16.xpose.msra.mxu0 %v839_v5  ;;  %v515_v58 = vstv %s722_s10  ;;  %s1180_s15 = scalar_select %p277_p11, %s1067_s25, 1 }
  0x1a   : > { %878 = vmatpush3.bf16.msra.mxu1 %v843_v8  ;;  %844 = vmatprep.subr.bf16.mxu0 %v843_v8  ;;  %v1170_v61 = vadd.s32 %v515_v58, %v513_v52  ;;  %v517_v62 = vadd.s32 %v515_v58, %v514_v54  ;;  %s1193_s10 = scalar_lea.hbm %s1248_s3, %s728_s19  ;;  %s1198_s25 = scalar_lea.sflag [#allocation3], %s244_s14 }
  0x1b   : > { %880 = vmatprep.subr.bf16.mxu1 %v847_v12  ;;  %s282_s13 = scalar_lea.vmem %s1251_s6, %s1180_s15 }
  0x1c   : > { %vm518_vm6 = vcmp.lt.s32.totalorder %v1170_v61, 32  ;;  %vm519_vm7 = vcmp.lt.s32.totalorder %v517_v62, 32 }
  0x1e   : > { %882 = vmatpush3.bf16.msra.mxu1 %v847_v12 }
  0x1f   : > { %884 = vmatprep.subr.bf16.mxu1 %v851_v15 }
  0x21   : > { %846 = vmatpush3.bf16.xpose.msra.mxu0 %v843_v8 }
  0x22   : > { %886 = vmatpush3.bf16.msra.mxu1 %v851_v15  ;;  %848 = vmatprep.subr.bf16.mxu0 %v847_v12 }
  0x23   : > { %888 = vmatprep.subr.bf16.mxu1 %v855_v18 }
  0x26   : > { %890 = vmatpush3.bf16.msra.mxu1 %v855_v18 }
  0x27   : > { %892 = vmatprep.subr.bf16.mxu1 %v859_v21 }
  0x29   : > { %850 = vmatpush3.bf16.xpose.msra.mxu0 %v847_v12 }
  0x2a   : > { %894 = vmatpush3.bf16.msra.mxu1 %v859_v21  ;;  %852 = vmatprep.subr.bf16.mxu0 %v851_v15 }
  0x2b   : > { %896 = vmatprep.subr.bf16.mxu1 %v863_v24 }
  0x2e   : > { %898 = vmatpush3.bf16.msra.mxu1 %v863_v24 }
  0x31   : > { %854 = vmatpush3.bf16.xpose.msra.mxu0 %v851_v15 }
  0x32   : > { %856 = vmatprep.subr.bf16.mxu0 %v855_v18 }
  0x39   : > { %858 = vmatpush3.bf16.xpose.msra.mxu0 %v855_v18 }
  0x3a   : > { %860 = vmatprep.subr.bf16.mxu0 %v859_v21 }
  0x41   : > { %862 = vmatpush3.bf16.xpose.msra.mxu0 %v859_v21 }
  0x42   : > { %864 = vmatprep.subr.bf16.mxu0 %v863_v24 }
  0x49   : > { %866 = vmatpush3.bf16.xpose.msra.mxu0 %v863_v24 }
  0x50   : > { %798 = vmatmul.mubr.f32.vlgmr.msra.gmra.mrb[0].mxu0 %v1158_v25 }
 0x123   : > { %v799_v26 = vpop.f32.mrb[0].mxu0 }
 0x124   : > { %v368_v27 = vpop.f32.mrb[1].mxu0  ;;  %v378_v30 = vmul.f32 2.0, %v799_v26 }
 0x125   : > { %v377_v29 = vmul.f32 2.0, %v368_v27 }
 0x126   : > { %v386_v32 = vsub.f32 %v717_v28, %v378_v30 }
 0x127   : > { %v385_v31 = vsub.f32 %v717_v28, %v377_v29 }
 0x129   : > { %387 = vmin.xlane.f32.xlu0 %v385_v31 }
 0x12d   : > { %389 = vmin.xlane.f32.xlu0 %v386_v32 }
 0x1b6   : > { %v388_v35 = vpop.xlane.xlu0 %387 }
 0x1b7   : > { %vm393_vm0 = vcmp.le.f32.partialorder %v385_v31, %v388_v35 }
 0x1b8   : > { %v395_v36 = vsel %vm393_vm0, %v392_v34, 128 }
 0x1b9   : > { %v398_v37 = vshra.s32 %v395_v36, 16  ;;  %v397_v43 = vand.u32 65535, %v395_v36 }
 0x1ba   : > { %v390_v38 = vpop.xlane.xlu0 %389 }
 0x1bb   : > { %vm394_vm1 = vcmp.le.f32.partialorder %v386_v32, %v390_v38  ;;  %v400_v39 = vcvt.s32.f32 %v398_v37  ;;  %v399_v46 = vcvt.s32.f32 %v397_v43 }
 0x1bc   : > { %v396_v40 = vsel %vm394_vm1, %v392_v34, 128 }
 0x1bd   : > { %401 = vmin.xlane.f32.xlu1 %v400_v39  ;;  %v412_v41 = vshra.s32 %v396_v40, 16  ;;  %v411_v44 = vand.u32 65535, %v396_v40 }
 0x1bf   : > { %v414_v42 = vcvt.s32.f32 %v412_v41  ;;  %v413_v49 = vcvt.s32.f32 %v411_v44 }
 0x1c1   : > { %415 = vmin.xlane.f32.xlu1 %v414_v42 }
 0x24a   : > { %v402_v45 = vpop.xlane.xlu1 %401 }
 0x24b   : > { %vm403_vm2 = vcmp.eq.f32.partialorder %v400_v39, %v402_v45  ;;  %v408_v51 = vcvt.f32.s32 %v402_v45 }
 0x24c   : > { %v404_v47 = vsel %vm403_vm2, %v399_v46, inf }
 0x24d   : > { %405 = vmin.xlane.f32.xlu0 %v404_v47  ;;  %v409_v55 = vshll.u32 %v408_v51, 16 }
 0x24e   : > { %v416_v48 = vpop.xlane.xlu1 %415 }
 0x24f   : > { %vm417_vm3 = vcmp.eq.f32.partialorder %v414_v42, %v416_v48  ;;  %v422_v56 = vcvt.f32.s32 %v416_v48 }
 0x250   : > { %v418_v50 = vsel %vm417_vm3, %v413_v49, inf }
 0x251   : > { %419 = vmin.xlane.f32.xlu1 %v418_v50  ;;  %v423_v63 = vshll.u32 %v422_v56, 16 }
 0x2da   : > { %v406_v53 = vpop.xlane.xlu0 %405 }
 0x2db   : > { %v407_v57 = vcvt.f32.s32 %v406_v53 }
 0x2dd   : > { %v410_v59 = vadd.s32 %v409_v55, %v407_v57 }
 0x2de   : > { %v420_v60 = vpop.xlane.xlu1 %419 }
 0x2df   : > { %509 = vst.msk [vmem:[%s275_s11] sm:$0xff] %vm508_vm4, %v410_v59  ;;  %v421_v0 = vcvt.f32.s32 %v420_v60  ;;  %vm425_vm5 = vcmp.eq.s32.totalorder %v392_v34, %v410_v59 }
 0x2e0   : > { %832 = vmatprep.mubr.msk.f32.mxu1 %vm425_vm5, %v1006_v1  ;;  %v718_v4 = vsel %vm425_vm5, 1.0, %v1007_v3 }
 0x2e1   : > { %v424_v2 = vadd.s32 %v423_v63, %v421_v0  ;;  %v538_v6 = vsel %vm518_vm6, %v718_v4, 0.0 }
 0x2e3   : > { %vm426_vm8 = vcmp.eq.s32.totalorder %v392_v34, %v424_v2  ;;  %510 = vst.msk [vmem:[%s275_s11 + $0x8] sm:$0xff] %vm508_vm4, %v424_v2  ;;  %s946_s11 = sshll.u32 %s1008_s9, 4  ;;  %s947_s11 = int_to_ptr.vmem [resolvable:$false] %s946_s11 }
 0x2e4   : > { %v719_v5 = vsel %vm426_vm8, 1.0, %v1007_v3  ;;  %833 = vmatmul.mubr.msk.f32.vlgmr.msra.gmra.mrb[0].mxu1 %vm426_vm8, %v1006_v1  ;;  %s948_s28 = scalar_lea.vmem %s947_s11, 512  ;;  %p949_p1 = scmp.lt.s32.totalorder %s1188_s18, %s947_s11 }
 0x2e5   : > { %v539_v7 = vsel %vm519_vm7, %v719_v5, 0.0  ;;  %p950_p2 = scmp.lt.s32.totalorder %s948_s28, %s942_s29 }
 0x2e6   : > { %v540_v8 = vadd.f32 %v539_v7, %v538_v6 }
 0x2e7   : > { %p951_p3 = por %p950_p2, %p949_p1 }
 0x2e8   : > { %v541_v10 = vrot.slane %v540_v8, 4 }
 0x2e9   : > { %p952_p4 = pnand %p951_p3, %p945_p0 }
 0x2ea   : > { %v542_v11 = vadd.f32 %v541_v10, %v540_v8 }
 0x2ec   : > { %v543_v12 = vrot.slane %v542_v11, 2 }
 0x2ee   : > { %v544_v13 = vadd.f32 %v543_v12, %v542_v11 }
 0x2f0   : > { %v545_v14 = vrot.slane %v544_v13, 1 }
 0x2f2   : > { %v546_v15 = vadd.f32 %v545_v14, %v544_v13 }
 0x2f4   : > { %547 = vst [vmem:[%s282_s13] sm:$0x1] %v546_v15 }
 0x3b7   : > { %v834_v16 = vpop.f32.mrb[0].mxu1 }
 0x3b8   : > { %507 = vst [vmem:[%s246_s17 + $0x8] sm:$0xff] %v834_v16  ;;  %v521_v17 = vsub.f32 %v834_v16, %v1158_v25  ;;  %v497_v18 = vpop.f32.mrb[1].mxu1 }
 0x3b9   : > { %506 = vst [vmem:[%s246_s17] sm:$0xff] %v497_v18  ;;  %v520_v19 = vsub.f32 %v497_v18, %v1124_v9 }
 0x3ba   : > { %v527_v20 = vsel %vm519_vm7, %v521_v17, 0.0 }
 0x3bb   : > { %955 = shalt.err (!%p952_p4)
}
 0x3bc   : > { %s956_s12 = scalar_lea.hbm %s1193_s10, 256  ;;  %s960_s16 = scalar_lea.hbm %s1248_s3, 512 }
 0x3bd   : > { %p957_p7 = scmp.ne.s32.totalorder %s1193_s10, %s956_s12  ;;  %p961_p10 = scmp.lt.u32.totalorder %s1193_s10, %s1248_s3 }
 0x3be   : > { %p962_p11 = scmp.lt.u32.totalorder %s960_s16, %s956_s12  ;;  %p964_p13 = scmp.lt.u32.totalorder %s956_s12, %s1193_s10 }
 0x3bf   : > { %p958_p8 = pnand %p957_p7, %p1084_p5 }
 0x3c0   : > { %p963_p12 = por %p962_p11, %p961_p10 }
 0x3c1   : > { %p959_p9 = pneg %p958_p8 }
 0x3c2   : > { %p965_p0 = por %p964_p13, %p963_p12 }
 0x3c4   : > { %p966_p1 = pnand %p965_p0, %p959_p9 }
 0x3c6   : > { %969 = shalt.err (!%p966_p1)
}
 0x3c7   : > { %s1009_s20 = smov 128   ;;  %s1010_s26 = smov 8   ;;  %v529_v9 = vmul.f32 %v527_v20, %v527_v20  ;;  %v526_v21 = vsel %vm518_vm6, %v520_v19, 0.0 }
 0x3c8   : > { %899 = dma.vmem_to_hbm [thread:$0]  (%p1084_p5), %s1188_s18, 256, %s1193_s10, %s1198_s25, %s1009_s20, %s1009_s20, %s1010_s26   ;;  %v528_v22 = vmul.f32 %v526_v21, %v526_v21 }
 0x3c9   : > { %s279_s11 = scalar_lea.vmem %s1250_s5, %s1180_s15 }
 0x3ca   : > { %v530_v23 = vadd.f32 %v529_v9, %v528_v22 }
 0x3cc   : > { %v531_v24 = vrot.slane %v530_v23, 4 }
 0x3ce   : > { %v532_v25 = vadd.f32 %v531_v24, %v530_v23 }
 0x3d0   : > { %v533_v26 = vrot.slane %v532_v25, 2 }
 0x3d2   : > { %v534_v27 = vadd.f32 %v533_v26, %v532_v25 }
 0x3d4   : > { %v535_v28 = vrot.slane %v534_v27, 1 }
 0x3d6   : > { %v536_v29 = vadd.f32 %v535_v28, %v534_v27 }
 0x3d8   : > { %537 = vst [vmem:[%s279_s11] sm:$0x1] %v536_v29 }
 0x3d9 PF: > { %p905_p5 = scmp.ge.s32.totalorder %s1004_s24, 2  ;;  %s598_s7 = sand.u32 1, %s992_s21  }
 0x3da   : > { %s599_s18 = scalar_lea.sflag [#allocation3], %s598_s7 }
 0x3db   : > { %p902_p2 = pnand %p905_p5, %p1088_p6 }
 0x3dd   : > { %987 = dma.done.wait (!%p902_p2), %s599_s18, 256  }
 0x3de   : > { %989 = vsyncadd (!%p902_p2), %s599_s18, 4294967040  ;;  %p17_p3 = scmp.ge.s32.totalorder %s1071_s27, 4   ;;  %s1254_s21 = smov %s996_s22 }
 0x3df   : > { %s1255_s22 = smov %s1000_s23  ;;  %s1256_s23 = smov %s1082_s30 }
 0x3e0   : > { %s1257_s24 = smov %s1071_s27  ;;  %19 = sbr.rel (!%p17_p3) target bundleno = 3 (0x3), region = 103 }
 0x3e7   :  { %624 = vsyncpa [#allocation3], 1 }
 0x3e8   :  { %626 = vsyncpa [#allocation3 + $0x1], 1 }

</bundles_post_ra>
